<compile_context>
chip_gen: v7x
topology: tpu7x:2x2x1
jax: 0.10.0
libtpu: 0.0.40
codegen_flags: <defaults>
</compile_context>

<pallas_src>
import functools
import math

import numpy as np

import jax
import jax.numpy as jnp
from jax.experimental import pallas as pl
from jax.experimental.pallas import tpu as pltpu

LANE = 128


def _round_up(x, m):
    return ((x + m - 1) // m) * m


def _gnnbp_fused_kernel(x_ref, *refs, residual, nlayers):
    """Fused forward: y = ReLU(x W0 [+x]) -> ... -> (h W_last [+h]).

    x_ref           : (TILE_N, F_pad)  f32 or bf16 node-feature tile
    refs[:nlayers]  : padded bf16 weights (resident across the whole grid)
    refs[nlayers]   : (TILE_N, C_pad)  output tile
    Activations never leave the chip between layers; accumulation is f32.
    """
    w_refs = refs[:nlayers]
    o_ref = refs[nlayers]

    x_in = x_ref[...]
    h_mxu = x_in.astype(jnp.bfloat16)          # bf16 MXU operand (no-op if bf16)
    # f32 residual source is only materialized when layer 0 is residual.
    h32 = x_in.astype(jnp.float32) if residual[0] else None

    y = None
    for li in range(nlayers):
        y = jnp.dot(h_mxu, w_refs[li][...], preferred_element_type=jnp.float32)
        if residual[li]:                       # Dense adds input iff in == out
            y = y + h32
        if li < nlayers - 1:
            y = jnp.maximum(y, 0.0)            # ReLU on all but the last layer
            h_mxu = y.astype(jnp.bfloat16)
            h32 = y if residual[li + 1] else None
    o_ref[...] = y.astype(o_ref.dtype)


def prepare_gnnbp_params(weights):
    """Pad feature dims to the 128-lane width and cast to bf16, ONCE.

    weights : list of (fin, fout) float32 Dense weights (x @ W layout).
    Returns a dict consumed by gnnbp_forward (hoisted out of the per-call path).
    Zero padding is exact: padded lanes stay zero through matmul/residual/ReLU.
    """
    nlayers = len(weights)
    dims = [weights[0].shape[0]] + [w.shape[1] for w in weights]
    pdims = [_round_up(d, LANE) for d in dims]
    # Residual exactly when the ORIGINAL (unpadded) layer is square.
    residual = tuple(w.shape[0] == w.shape[1] for w in weights)

    w_pad = []
    for li, w in enumerate(weights):
        wp = jnp.zeros((pdims[li], pdims[li + 1]), jnp.float32)
        wp = wp.at[: w.shape[0], : w.shape[1]].set(w)
        w_pad.append(wp.astype(jnp.bfloat16))
    return dict(w_pad=w_pad, residual=residual, dims=dims, pdims=pdims,
                nlayers=nlayers)


def _vmem_capacity_bytes():
    try:
        cap = int(pltpu.get_tpu_info().vmem_capacity_bytes)
        if cap > 0:
            return cap
    except Exception:
        pass
    return 64 * 1024 * 1024      # conservative default: v7x per-TC VMEM


def _pick_tile_n(n_rows, pdims, weight_bytes, in_itemsize, out_itemsize, budget):
    """Largest node tile (multiple of 8) whose residency fits the VMEM budget,
    shrunk so the grid has >= 2 steps (both v7x TensorCores get work)."""
    max_pd = max(pdims)
    n8 = _round_up(max(n_rows, 1), 8)
    tile = 8
    for cand in (1024, 512, 256, 128, 64, 32, 16, 8):
        if cand > n8:
            continue
        resid = (weight_bytes                              # weights resident once
                 + 2 * cand * pdims[0] * in_itemsize       # double-buffered in
                 + 2 * cand * pdims[-1] * out_itemsize     # double-buffered out
                 + 3 * cand * max_pd * 4)                  # f32 intermediates
        if resid <= budget:
            tile = cand
            break
    while tile > 8 and pl.cdiv(n8, tile) < 2:              # >= 2 grid steps
        tile //= 2
    return max(8, tile)


def gnnbp_forward(x, params, *, tile_n=None, out_dtype=jnp.float32):
    """Fused GnnBP forward (inference mode: dropout == identity).

    x      : (N, nfeat) float32 (or bfloat16) node features
    params : dict from prepare_gnnbp_params()
    """
    w_pad = params["w_pad"]
    residual = params["residual"]
    dims = params["dims"]
    pdims = params["pdims"]
    nlayers = params["nlayers"]

    n, nfeat = x.shape
    assert nfeat == dims[0]
    nclass = dims[-1]

    # --- input: skip the host-side padded copy when already lane-aligned ----
    if nfeat % LANE == 0:
        x_dev = x                  # streamed as-is; bf16 cast happens in-kernel
    else:
        n_in = _round_up(n, 8)
        x_dev = jnp.zeros((n_in, pdims[0]), jnp.bfloat16)
        x_dev = x_dev.at[:n, :nfeat].set(x.astype(jnp.bfloat16))

    n_out = _round_up(n, 8)        # output rows; last grid block may be ragged

    weight_bytes = sum(int(w.size) * 2 for w in w_pad)
    cap = _vmem_capacity_bytes()
    budget = max(16 << 20, min(int(cap * 0.8), cap - (8 << 20)))

    in_itemsize = int(x_dev.dtype.itemsize)
    out_itemsize = int(np.dtype(out_dtype).itemsize)
    if tile_n is None:
        tile_n = _pick_tile_n(n_out, pdims, weight_bytes,
                              in_itemsize, out_itemsize, budget)
    tile_n = max(8, _round_up(int(tile_n), 8))

    grid = (pl.cdiv(n_out, tile_n),)

    kernel = functools.partial(
        _gnnbp_fused_kernel, residual=residual, nlayers=nlayers)

    flops = 2 * n_out * sum(pdims[li] * pdims[li + 1] for li in range(nlayers))
    bytes_accessed = (int(x_dev.size) * in_itemsize
                      + weight_bytes
                      + n_out * pdims[-1] * out_itemsize)
    cost = pl.CostEstimate(flops=flops, transcendentals=0,
                           bytes_accessed=bytes_accessed)

    def _call(single_buffer_weights):
        in_specs = [
            pl.BlockSpec((tile_n, pdims[0]), lambda i: (i, 0),
                         memory_space=pltpu.MemorySpace.VMEM)
        ]
        w_kwargs = dict(memory_space=pltpu.MemorySpace.VMEM)
        if single_buffer_weights:
            # Constant index_map => the block never changes; one VMEM buffer is
            # enough (default double-buffering would double weight residency).
            w_kwargs["pipeline_mode"] = pl.Buffered(buffer_count=1)
        for li in range(nlayers):
            in_specs.append(
                pl.BlockSpec((pdims[li], pdims[li + 1]), lambda i: (0, 0),
                             **w_kwargs))
        out_spec = pl.BlockSpec((tile_n, pdims[-1]), lambda i: (i, 0),
                                memory_space=pltpu.MemorySpace.VMEM)
        return pl.pallas_call(
            kernel,
            out_shape=jax.ShapeDtypeStruct((n_out, pdims[-1]), out_dtype),
            grid=grid,
            in_specs=in_specs,
            out_specs=out_spec,
            compiler_params=pltpu.CompilerParams(
                dimension_semantics=("parallel",),
                vmem_limit_bytes=int(budget)),
            cost_estimate=cost,
        )(x_dev, *w_pad)

    try:
        out_p = _call(True)
    except Exception:
        # Fallback: some JAX/Mosaic builds reject single-buffered input blocks.
        out_p = _call(False)

    return out_p[:n, :nclass]


def init_gnnbp_params(key, nfeat, nlayers, nhidden, nclass):
    """Deterministic init matching Dense.reset_parameters:
    W ~ U(-1/sqrt(out_features), 1/sqrt(out_features)), shape (in, out)."""
    dims = [(nfeat, nhidden)]
    for _ in range(nlayers - 2):
        dims.append((nhidden, nhidden))
    dims.append((nhidden, nclass))
    weights = []
    for (fin, fout) in dims:
        key, sub = jax.random.split(key)
        stdv = 1.0 / math.sqrt(fout)
        weights.append(
            jax.random.uniform(sub, (fin, fout), jnp.float32, -stdv, stdv))
    return weights


if __name__ == "__main__":
    # Small shapes consistent with the module.
    N_NODES = 64
    NFEAT = 16
    NLAYERS = 3
    NHIDDEN = 32
    NCLASS = 8

    key = jax.random.PRNGKey(0)
    key, kx = jax.random.split(key)
    x = jax.random.normal(kx, (N_NODES, NFEAT), jnp.float32)

    weights = init_gnnbp_params(key, NFEAT, NLAYERS, NHIDDEN, NCLASS)
    params = prepare_gnnbp_params(weights)        # pad + bf16 cast, done once

    out = gnnbp_forward(x, params)
    out = jax.block_until_ready(out)
    assert out.shape == (N_NODES, NCLASS)

    # Reference 1: same semantics, same bf16-operand / f32-accumulation recipe.
    def ref_bf16(x, weights):
        h32 = x.astype(jnp.bfloat16).astype(jnp.float32)
        h_b = x.astype(jnp.bfloat16)
        for li, w in enumerate(weights):
            y = jnp.dot(h_b, w.astype(jnp.bfloat16),
                        preferred_element_type=jnp.float32)
            if w.shape[0] == w.shape[1]:
                y = y + h32
            if li < len(weights) - 1:
                y = jnp.maximum(y, 0.0)
            h32 = y
            h_b = y.astype(jnp.bfloat16)
        return h32

    # Reference 2: pure f32 (original module math, eval mode) — loose check.
    def ref_f32(x, weights):
        h = x
        for li, w in enumerate(weights):
            y = h @ w
            if w.shape[0] == w.shape[1]:
                y = y + h
            if li < len(weights) - 1:
                y = jnp.maximum(y, 0.0)
            h = y
        return h

    r_bf16 = ref_bf16(x, weights)
    r_f32 = ref_f32(x, weights)

    assert jnp.allclose(out, r_bf16, atol=1e-2, rtol=1e-2), \
        float(jnp.max(jnp.abs(out - r_bf16)))
    assert jnp.allclose(out, r_f32, atol=2e-1, rtol=1e-1), \
        float(jnp.max(jnp.abs(out - r_f32)))

    print("KERNEL_OK")
</pallas_src>

<mosaic_0001>
module attributes {stable_mosaic.version = 11 : i64} {
  func.func @_gnnbp_fused_kernel(%arg0: i32, %arg1: memref<32x128xbf16, #tpu.memory_space<vmem>>, %arg2: memref<128x128xbf16, #tpu.memory_space<vmem>>, %arg3: memref<128x128xbf16, #tpu.memory_space<vmem>>, %arg4: memref<128x128xbf16, #tpu.memory_space<vmem>>, %arg5: memref<32x128xf32, #tpu.memory_space<vmem>>) attributes {dimension_semantics = [#tpu.dimension_semantics<parallel>], iteration_bounds = array<i64: 2>, scalar_prefetch = 0 : i64, scratch_operands = 0 : i64, tpu.core_type = #tpu.core_type<tc>, window_params = [{transform_indices = @transform_0, window_bounds = array<i64: 32, 128>}, {pipeline_mode = #tpu.pipeline_mode<synchronous>, transform_indices = @transform_1, window_bounds = array<i64: 128, 128>}, {pipeline_mode = #tpu.pipeline_mode<synchronous>, transform_indices = @transform_2, window_bounds = array<i64: 128, 128>}, {pipeline_mode = #tpu.pipeline_mode<synchronous>, transform_indices = @transform_3, window_bounds = array<i64: 128, 128>}, {transform_indices = @transform_4, window_bounds = array<i64: 32, 128>}]} {
    %c0 = arith.constant 0 : index
    %c0_0 = arith.constant 0 : index
    %0 = vector.load %arg1[%c0, %c0_0] : memref<32x128xbf16, #tpu.memory_space<vmem>>, vector<32x128xbf16>
    %c0_1 = arith.constant 0 : index
    %c0_2 = arith.constant 0 : index
    %1 = vector.load %arg2[%c0_1, %c0_2] : memref<128x128xbf16, #tpu.memory_space<vmem>>, vector<128x128xbf16>
    %cst = arith.constant dense<0.000000e+00> : vector<32x128xf32>
    %2 = tpu.matmul %0, %1, %cst {dimension_numbers = #tpu.dot_dimension_numbers<[1], [0], [0], [1], [0, 0, 1, 1], [], []>} : vector<32x128xbf16>, vector<128x128xbf16>, vector<32x128xf32> -> vector<32x128xf32>
    %cst_3 = arith.constant 0.000000e+00 : f32
    %3 = vector.broadcast %cst_3 : f32 to vector<32x128xf32>
    %4 = arith.maximumf %2, %3 : vector<32x128xf32>
    %5 = arith.truncf %4 : vector<32x128xf32> to vector<32x128xbf16>
    %c0_4 = arith.constant 0 : index
    %c0_5 = arith.constant 0 : index
    %6 = vector.load %arg3[%c0_4, %c0_5] : memref<128x128xbf16, #tpu.memory_space<vmem>>, vector<128x128xbf16>
    %cst_6 = arith.constant dense<0.000000e+00> : vector<32x128xf32>
    %7 = tpu.matmul %5, %6, %cst_6 {dimension_numbers = #tpu.dot_dimension_numbers<[1], [0], [0], [1], [0, 0, 1, 1], [], []>} : vector<32x128xbf16>, vector<128x128xbf16>, vector<32x128xf32> -> vector<32x128xf32>
    %8 = arith.addf %7, %4 : vector<32x128xf32>
    %cst_7 = arith.constant 0.000000e+00 : f32
    %9 = vector.broadcast %cst_7 : f32 to vector<32x128xf32>
    %10 = arith.maximumf %8, %9 : vector<32x128xf32>
    %11 = arith.truncf %10 : vector<32x128xf32> to vector<32x128xbf16>
    %c0_8 = arith.constant 0 : index
    %c0_9 = arith.constant 0 : index
    %12 = vector.load %arg4[%c0_8, %c0_9] : memref<128x128xbf16, #tpu.memory_space<vmem>>, vector<128x128xbf16>
    %cst_10 = arith.constant dense<0.000000e+00> : vector<32x128xf32>
    %13 = tpu.matmul %11, %12, %cst_10 {dimension_numbers = #tpu.dot_dimension_numbers<[1], [0], [0], [1], [0, 0, 1, 1], [], []>} : vector<32x128xbf16>, vector<128x128xbf16>, vector<32x128xf32> -> vector<32x128xf32>
    %c0_11 = arith.constant 0 : index
    %c0_12 = arith.constant 0 : index
    %14 = vector.load %arg5[%c0_11, %c0_12] : memref<32x128xf32, #tpu.memory_space<vmem>>, vector<32x128xf32>
    tpu.vector_store %arg5[%c0_11, %c0_12], %13 {strides = array<i32>} : memref<32x128xf32, #tpu.memory_space<vmem>>, vector<32x128xf32>,
    return
  }
  func.func @transform_0(%arg0: i32) -> (i32, i32) {
    %c0_i32 = arith.constant 0 : i32
    %c0_i32_0 = arith.constant 0 : i32
    return %arg0, %c0_i32 : i32, i32
  }
  func.func @transform_1(%arg0: i32) -> (i32, i32) {
    %c0_i32 = arith.constant 0 : i32
    %c0_i32_0 = arith.constant 0 : i32
    %c0_i32_1 = arith.constant 0 : i32
    return %c0_i32, %c0_i32_0 : i32, i32
  }
  func.func @transform_2(%arg0: i32) -> (i32, i32) {
    %c0_i32 = arith.constant 0 : i32
    %c0_i32_0 = arith.constant 0 : i32
    %c0_i32_1 = arith.constant 0 : i32
    return %c0_i32, %c0_i32_0 : i32, i32
  }
  func.func @transform_3(%arg0: i32) -> (i32, i32) {
    %c0_i32 = arith.constant 0 : i32
    %c0_i32_0 = arith.constant 0 : i32
    %c0_i32_1 = arith.constant 0 : i32
    return %c0_i32, %c0_i32_0 : i32, i32
  }
  func.func @transform_4(%arg0: i32) -> (i32, i32) {
    %c0_i32 = arith.constant 0 : i32
    %c0_i32_0 = arith.constant 0 : i32
    return %arg0, %c0_i32 : i32, i32
  }
}

module attributes {stable_mosaic.version = 11 : i64} {
  func.func @_gnnbp_fused_kernel(%arg0: i32, %arg1: memref<32x128xbf16, #tpu.memory_space<vmem>>, %arg2: memref<128x128xbf16, #tpu.memory_space<vmem>>, %arg3: memref<128x128xbf16, #tpu.memory_space<vmem>>, %arg4: memref<128x128xbf16, #tpu.memory_space<vmem>>, %arg5: memref<32x128xf32, #tpu.memory_space<vmem>>) attributes {dimension_semantics = [#tpu.dimension_semantics<parallel>], iteration_bounds = array<i64: 2>, scalar_prefetch = 0 : i64, scratch_operands = 0 : i64, tpu.core_type = #tpu.core_type<tc>, window_params = [{transform_indices = @transform_0, window_bounds = array<i64: 32, 128>}, {pipeline_mode = #tpu.pipeline_mode<synchronous>, transform_indices = @transform_1, window_bounds = array<i64: 128, 128>}, {pipeline_mode = #tpu.pipeline_mode<synchronous>, transform_indices = @transform_2, window_bounds = array<i64: 128, 128>}, {pipeline_mode = #tpu.pipeline_mode<synchronous>, transform_indices = @transform_3, window_bounds = array<i64: 128, 128>}, {transform_indices = @transform_4, window_bounds = array<i64: 32, 128>}]} {
    %c0 = arith.constant 0 : index
    %c0_0 = arith.constant 0 : index
    %0 = vector.load %arg1[%c0, %c0_0] : memref<32x128xbf16, #tpu.memory_space<vmem>>, vector<32x128xbf16>
    %c0_1 = arith.constant 0 : index
    %c0_2 = arith.constant 0 : index
    %1 = vector.load %arg2[%c0_1, %c0_2] : memref<128x128xbf16, #tpu.memory_space<vmem>>, vector<128x128xbf16>
    %cst = arith.constant dense<0.000000e+00> : vector<32x128xf32>
    %2 = tpu.matmul %0, %1, %cst {dimension_numbers = #tpu.dot_dimension_numbers<[1], [0], [0], [1], [0, 0, 1, 1], [], []>} : vector<32x128xbf16>, vector<128x128xbf16>, vector<32x128xf32> -> vector<32x128xf32>
    %cst_3 = arith.constant 0.000000e+00 : f32
    %3 = vector.broadcast %cst_3 : f32 to vector<32x128xf32>
    %4 = arith.maximumf %2, %3 : vector<32x128xf32>
    %5 = arith.truncf %4 : vector<32x128xf32> to vector<32x128xbf16>
    %c0_4 = arith.constant 0 : index
    %c0_5 = arith.constant 0 : index
    %6 = vector.load %arg3[%c0_4, %c0_5] : memref<128x128xbf16, #tpu.memory_space<vmem>>, vector<128x128xbf16>
    %cst_6 = arith.constant dense<0.000000e+00> : vector<32x128xf32>
    %7 = tpu.matmul %5, %6, %cst_6 {dimension_numbers = #tpu.dot_dimension_numbers<[1], [0], [0], [1], [0, 0, 1, 1], [], []>} : vector<32x128xbf16>, vector<128x128xbf16>, vector<32x128xf32> -> vector<32x128xf32>
    %8 = arith.addf %7, %4 : vector<32x128xf32>
    %cst_7 = arith.constant 0.000000e+00 : f32
    %9 = vector.broadcast %cst_7 : f32 to vector<32x128xf32>
    %10 = arith.maximumf %8, %9 : vector<32x128xf32>
    %11 = arith.truncf %10 : vector<32x128xf32> to vector<32x128xbf16>
    %c0_8 = arith.constant 0 : index
    %c0_9 = arith.constant 0 : index
    %12 = vector.load %arg4[%c0_8, %c0_9] : memref<128x128xbf16, #tpu.memory_space<vmem>>, vector<128x128xbf16>
    %cst_10 = arith.constant dense<0.000000e+00> : vector<32x128xf32>
    %13 = tpu.matmul %11, %12, %cst_10 {dimension_numbers = #tpu.dot_dimension_numbers<[1], [0], [0], [1], [0, 0, 1, 1], [], []>} : vector<32x128xbf16>, vector<128x128xbf16>, vector<32x128xf32> -> vector<32x128xf32>
    %c0_11 = arith.constant 0 : index
    %c0_12 = arith.constant 0 : index
    %14 = vector.load %arg5[%c0_11, %c0_12] : memref<32x128xf32, #tpu.memory_space<vmem>>, vector<32x128xf32>
    tpu.vector_store %arg5[%c0_11, %c0_12], %13 {strides = array<i32>} : memref<32x128xf32, #tpu.memory_space<vmem>>, vector<32x128xf32>,
    return
  }
  func.func @transform_0(%arg0: i32) -> (i32, i32) {
    %c0_i32 = arith.constant 0 : i32
    %c0_i32_0 = arith.constant 0 : i32
    return %arg0, %c0_i32 : i32, i32
  }
  func.func @transform_1(%arg0: i32) -> (i32, i32) {
    %c0_i32 = arith.constant 0 : i32
    %c0_i32_0 = arith.constant 0 : i32
    %c0_i32_1 = arith.constant 0 : i32
    return %c0_i32, %c0_i32_0 : i32, i32
  }
  func.func @transform_2(%arg0: i32) -> (i32, i32) {
    %c0_i32 = arith.constant 0 : i32
    %c0_i32_0 = arith.constant 0 : i32
    %c0_i32_1 = arith.constant 0 : i32
    return %c0_i32, %c0_i32_0 : i32, i32
  }
  func.func @transform_3(%arg0: i32) -> (i32, i32) {
    %c0_i32 = arith.constant 0 : i32
    %c0_i32_0 = arith.constant 0 : i32
    %c0_i32_1 = arith.constant 0 : i32
    return %c0_i32, %c0_i32_0 : i32, i32
  }
  func.func @transform_4(%arg0: i32) -> (i32, i32) {
    %c0_i32 = arith.constant 0 : i32
    %c0_i32_0 = arith.constant 0 : i32
    return %arg0, %c0_i32 : i32, i32
  }
}

</mosaic_0001>

<bundles_post_ra>
// kernel: tpu_custom_call.1
= control target key start
LH: loop header
LB: loop body
LE: loop exit
PB: predicated region body
PF: predicated region fallthrough
CT: control target
= control target key end

     0   :  { %9 = vsyncpa [#allocation3], 0  ;;  %s1495_s0 = inlined_call_operand.hbm [shape: bf16[64,128], index: 0, kind: input, shape index: {}]   ;;  %s1496_s1 = inlined_call_operand.hbm [shape: bf16[128,128], index: 1, kind: input, shape index: {}]   ;;  %s1497_s2 = inlined_call_operand.hbm [shape: bf16[128,128], index: 2, kind: input, shape index: {}]   ;;  %s1498_s3 = inlined_call_operand.hbm [shape: bf16[128,128], index: 3, kind: input, shape index: {}]   ;;  %s1499_s4 = inlined_call_operand.hbm [shape: f32[64,128], index: 4, kind: output, shape index: {}]  }
   0x1   :  { %11 = vsyncpa [#allocation3 + $0x1], 0 }
   0x2   :  { %12 = vsyncpa [#allocation6], 0 }
   0x3   :  { %13 = vsyncpa [#allocation9], 0 }
   0x4   :  { %14 = vsyncpa [#allocation4], 0 }
   0x5   :  { %16 = vsyncpa [#allocation4 + $0x1], 0  ;;  %s1219_s15 = smov 0   ;;  %s1221_s16 = smov 0  }
   0x6   :  { %s1223_s17 = smov 0   ;;  %s1225_s18 = smov 0  }
   0x7 LB: > { %s1240_s19 = sadd.s32 4294967295, %s1183_s18   ;;  %s750_s20 = sadd.s32 4294967294, %s1183_s18   ;;  %s1183_s18 = sphi %s1225_s18, %s1522_s18   ;;  %s1179_s17 = sphi %s1223_s17, %s1521_s17   ;;  %s1175_s16 = sphi %s1221_s16, %s1520_s16   ;;  %s1171_s15 = sphi %s1219_s15, %s1519_s15  }
   0x8   : > { %p42_p0 = scmp.ne.s32.totalorder %s1175_s16, %s1171_s15  ;;  %p1500_p1 = scmp.eq.s32.totalorder %s1240_s19, 0 }
   0x9   : > { %p135_p3 = scmp.eq.s32.totalorder %s750_s20, 1  ;;  %p751_p5 = scmp.ge.s32.totalorder %s1183_s18, 1 }
   0xa   : > { %p1249_p4 = por %p1500_p1, %p42_p0  ;;  %p142_p7 = scmp.lt.s32.totalorder %s1183_s18, 3 }
   0xb   : > { %p1254_p6 = por %p135_p3, %p42_p0  ;;  %s1185_s24 = smov [#allocation5]  }
   0xc   : > { %s1503_s21 = scalar_select %p1249_p4, 1, 0 }
   0xd   : > { %s1504_s22 = scalar_select %p1254_p6, 1, 0 }
   0xe   : > { %p1259_p8 = pnand %p751_p5, %p142_p7  ;;  %s154_s25 = sshll.u32 %s1185_s24, 4  ;;  %s1263_s25 = int_to_ptr.vmem [resolvable:$true] %s154_s25 }
   0xf   : > { %s1186_s27 = smov [#allocation7]   ;;  %s1187_s29 = smov [#allocation8]  }
  0x10   : > { %s1505_s23 = scalar_select %p1259_p8, 1, 0 }
  0x11   : > { %p904_p9 = pneg %p1259_p8  ;;  %s167_s28 = sshll.u32 %s1186_s27, 4  ;;  %s1274_s28 = int_to_ptr.vmem [resolvable:$true] %s167_s28 }
  0x12   : > { %s1276_s30 = sshll.u32 %s1187_s29, 4  ;;  %s995_s7 = scalar_lea.hbm %s1496_s1, 1024  ;;  %s181_s30 = int_to_ptr.vmem [resolvable:$true] %s1276_s30 }
  0x13   : > { %p1270_p11 = pnand %p904_p9, %p1500_p1  ;;  %p996_p12 = scmp.ne.s32.totalorder %s1496_s1, %s995_s7 }
  0x14   : > { %p1002_p5 = scmp.lt.u32.totalorder %s995_s7, %s1496_s1 }
  0x15   : > { %p1286_p13 = pneg %p1270_p11 }
  0x17   : > { %p998_p0 = pnand %p1286_p13, %p996_p12 }
  0x19   : > { %p999_p3 = pneg %p998_p0 }
  0x1b   : > { %p1004_p7 = pnand %p1002_p5, %p999_p3 }
  0x1d   : > { %1007 = shalt.err (!%p1004_p7)
}
  0x1e   : > { %s1008_s13 = scalar_lea.vmem %s1263_s25, 1024  ;;  %p1016_p2 = scmp.lt.s32.totalorder %s1263_s25, %s1263_s25 }
  0x1f   : > { %p1009_p9 = scmp.ne.s32.totalorder %s1263_s25, %s1008_s13  ;;  %p1017_p6 = scmp.lt.s32.totalorder %s1008_s13, %s1008_s13 }
  0x21   : > { %p1011_p10 = pnand %p1009_p9, %p1286_p13  ;;  %p1018_p12 = por %p1017_p6, %p1016_p2 }
  0x23   : > { %p1012_p1 = pneg %p1011_p10 }
  0x25   : > { %p1019_p0 = pnand %p1018_p12, %p1012_p1 }
  0x27   : > { %1022 = shalt.err (!%p1019_p0)
}
  0x28   : > { %s1188_s14 = smov 64   ;;  %s1189_s20 = smov 4  }
  0x29   : > { %907 = dma.hbm_to_vmem [thread:$0]  (!%p1270_p11), %s1496_s1, 1024, %s1263_s25, [#allocation6], %s1188_s14, %s1188_s14, %s1189_s20  }
  0x2a   : > { %s1023_s6 = scalar_lea.hbm %s1497_s2, 1024 }
  0x2b   : > { %p1024_p1 = scmp.ne.s32.totalorder %s1497_s2, %s1023_s6  ;;  %p1030_p10 = scmp.lt.u32.totalorder %s1023_s6, %s1497_s2 }
  0x2d   : > { %p1026_p2 = pnand %p1024_p1, %p1286_p13 }
  0x2f   : > { %p1027_p6 = pneg %p1026_p2 }
  0x31   : > { %p1032_p3 = pnand %p1030_p10, %p1027_p6 }
  0x33   : > { %1035 = shalt.err (!%p1032_p3)
}
  0x34   : > { %s1036_s25 = scalar_lea.vmem %s1274_s28, 1024  ;;  %p1044_p12 = scmp.lt.s32.totalorder %s1274_s28, %s1274_s28 }
  0x35   : > { %p1037_p5 = scmp.ne.s32.totalorder %s1274_s28, %s1036_s25  ;;  %p1045_p0 = scmp.lt.s32.totalorder %s1036_s25, %s1036_s25 }
  0x37   : > { %p1039_p7 = pnand %p1037_p5, %p1286_p13  ;;  %p1046_p1 = por %p1045_p0, %p1044_p12 }
  0x39   : > { %p1040_p9 = pneg %p1039_p7 }
  0x3b   : > { %p1047_p2 = pnand %p1046_p1, %p1040_p9 }
  0x3d   : > { %1050 = shalt.err (!%p1047_p2)
}
  0x3e   : > { %910 = dma.hbm_to_vmem [thread:$0]  (!%p1270_p11), %s1497_s2, 1024, %s1274_s28, [#allocation6], %s1188_s14, %s1188_s14, %s1189_s20  }
  0x3f   : > { %s1051_s29 = scalar_lea.hbm %s1498_s3, 1024 }
  0x40   : > { %p1052_p6 = scmp.ne.s32.totalorder %s1498_s3, %s1051_s29  ;;  %p1058_p5 = scmp.lt.u32.totalorder %s1051_s29, %s1498_s3 }
  0x42   : > { %p1054_p10 = pnand %p1052_p6, %p1286_p13 }
  0x44   : > { %p1055_p3 = pneg %p1054_p10 }
  0x46   : > { %p1060_p7 = pnand %p1058_p5, %p1055_p3 }
  0x48   : > { %1063 = shalt.err (!%p1060_p7)
}
  0x49   : > { %s1064_s9 = scalar_lea.vmem %s181_s30, 1024  ;;  %p1072_p1 = scmp.lt.s32.totalorder %s181_s30, %s181_s30 }
  0x4a   : > { %p1065_p9 = scmp.ne.s32.totalorder %s181_s30, %s1064_s9  ;;  %p1073_p2 = scmp.lt.s32.totalorder %s1064_s9, %s1064_s9 }
  0x4c   : > { %p1067_p12 = pnand %p1065_p9, %p1286_p13  ;;  %p1074_p4 = por %p1073_p2, %p1072_p1 }
  0x4e   : > { %p1068_p0 = pneg %p1067_p12 }
  0x50   : > { %p1075_p8 = pnand %p1074_p4, %p1068_p0 }
  0x52   : > { %1078 = shalt.err (!%p1075_p8)
}
  0x53   : > { %913 = dma.hbm_to_vmem [thread:$0]  (!%p1270_p11), %s1498_s3, 1024, %s181_s30, [#allocation9], %s1188_s14, %s1188_s14, %s1189_s20  }
  0x54   : > { %s1359_s10 = sadd.s32 1, %s1183_s18   ;;  %s29_s25 = sadd.s32 1, %s1179_s17 }
  0x55   : > { %s26_s26 = ssub.s32 %s1183_s18, %s1359_s10  ;;  %p36_p8 = scmp.ne.s32.totalorder %s1179_s17, %s1175_s16 }
  0x56   : > { %p27_p4 = scmp.eq.s32.totalorder %s26_s26, 0  ;;  %p37_p13 = scmp.eq.s32.totalorder %s1183_s18, 0 }
  0x57   : > { %p925_p6 = scmp.lt.s32.totalorder %s1183_s18, 2  ;;  %p1508_p3 = scmp.eq.s32.totalorder %s1240_s19, 1 }
  0x58   : > { %s1369_s12 = scalar_select %p27_p4, %s1179_s17, %s29_s25  }
  0x59   : > { %p38_p10 = por %p37_p13, %p36_p8  ;;  %p1373_p5 = por %p1508_p3, %p36_p8 }
  0x5a   : > { %s194_s24 = sand.u32 1, %s1179_s17   ;;  %s796_s27 = sshll.u32 %s1183_s18, 8 }
  0x5b   : > { %s756_s30 = sshll.u32 %s194_s24, 4  ;;  %s1382_s6 = scalar_lea.hbm %s1495_s0, %s796_s27 }
  0x5c   : > { %s198_s7 = scalar_lea.vmem [#allocation2], %s756_s30  ;;  %p1384_p11 = pnand %p925_p6, %p38_p10 }
  0x5d   : > { %s205_s8 = sshll.u32 %s198_s7, 4  ;;  %s1390_s28 = scalar_lea.sflag [#allocation3], %s194_s24  ;;  %s1388_s8 = int_to_ptr.vmem [resolvable:$true] %s205_s8 }
  0x5e   : > { %s1079_s11 = scalar_lea.hbm %s1382_s6, 256  ;;  %p1081_p9 = pneg %p1384_p11 }
  0x5f   : > { %p1080_p7 = scmp.ne.s32.totalorder %s1382_s6, %s1079_s11  ;;  %s1084_s27 = scalar_lea.hbm %s1495_s0, 512 }
  0x60   : > { %p1085_p1 = scmp.lt.u32.totalorder %s1382_s6, %s1495_s0  ;;  %p1086_p2 = scmp.lt.u32.totalorder %s1084_s27, %s1079_s11 }
  0x61   : > { %p1082_p12 = pnand %p1081_p9, %p1080_p7  ;;  %p1088_p8 = scmp.lt.u32.totalorder %s1079_s11, %s1382_s6 }
  0x62   : > { %p1087_p4 = por %p1086_p2, %p1085_p1 }
  0x63   : > { %p1083_p0 = pneg %p1082_p12 }
  0x64   : > { %p1089_p13 = por %p1088_p8, %p1087_p4 }
  0x66   : > { %p1090_p6 = pnand %p1089_p13, %p1083_p0 }
  0x68   : > { %1093 = shalt.err (!%p1090_p6)
}
  0x69   : > { %s1094_s24 = scalar_lea.vmem %s1388_s8, 256  ;;  %s1190_s5 = smov [#allocation2]  }
  0x6a   : > { %p1095_p10 = scmp.ne.s32.totalorder %s1388_s8, %s1094_s24  ;;  %s1099_s7 = sshll.u32 %s1190_s5, 4  ;;  %s1100_s7 = int_to_ptr.vmem [resolvable:$false] %s1099_s7 }
  0x6b   : > { %s1101_s26 = scalar_lea.vmem %s1100_s7, 512  ;;  %p1102_p12 = scmp.lt.s32.totalorder %s1388_s8, %s1100_s7 }
  0x6c   : > { %p1097_p3 = pnand %p1095_p10, %p1081_p9  ;;  %p1103_p1 = scmp.lt.s32.totalorder %s1101_s26, %s1094_s24 }
  0x6e   : > { %p1098_p7 = pneg %p1097_p3  ;;  %p1104_p2 = por %p1103_p1, %p1102_p12 }
  0x70   : > { %p1105_p4 = pnand %p1104_p2, %p1098_p7 }
  0x72   : > { %1108 = shalt.err (!%p1105_p4)
}
  0x73   : > { %917 = dma.hbm_to_vmem [thread:$0]  (!%p1384_p11), %s1382_s6, 256, %s1388_s8, %s1390_s28, %s1188_s14, %s1188_s14, %s1189_s20  }
  0x74   : > { %p1511_p9 = scmp.ne.s32.totalorder %s1505_s23, 0 }
  0x75   : > { %s1424_s11 = sand.u32 (!%p1511_p9), 1, %s1175_s16   ;;  %p1512_p0 = scmp.ne.s32.totalorder (!%p1511_p9), %s1503_s21, 0 }
  0x76   : > { %217 = sbr.rel (%p1511_p9) target bundleno = 838 (0x346), region = 36  ;;  %s760_s25 = sshll.u32 (!%p1511_p9), %s1424_s11, 4 }
  0x77   : > { %s220_s27 = scalar_lea.sflag (!%p1511_p9), [#allocation3], %s1424_s11  ;;  %s1428_s30 = scalar_lea.vmem (!%p1511_p9), [#allocation2], %s760_s25 }
  0x7d   : > { %1154 = dma.done.wait (%p1512_p0), %s220_s27, 256  }
  0x7e   : > { %1156 = vsyncadd (%p1512_p0), %s220_s27, 4294967040  ;;  %p1513_p11 = scmp.eq.s32.totalorder %s1240_s19, 0 }
  0x80   : > { %1158 = dma.done.wait (%p1513_p11), [#allocation6], 2048   ;;  %p1514_p8 = pmov %p1513_p11 }
  0x82   : > { %1160 = vsyncadd (%p1514_p8), [#allocation6], 4294965248  ;;  %p1515_p13 = pmov %p1514_p8 }
  0x83   : > { %p1516_p6 = pmov %p1514_p8 }
  0x84   : > { %1162 = dma.done.wait (%p1515_p13), [#allocation9], 1024  }
  0x85   : > { %1164 = vsyncadd (%p1516_p6), [#allocation9], 4294966272  ;;  %v969_v0 = vld [vmem:[#allocation5] sm:$0xff]   ;;  %v970_v1 = vld [vmem:[#allocation5 + $0x8] sm:$0xff]   ;;  %s764_s21 = sshll.u32 %s1424_s11, 5  ;;  %s797_s20 = sshll.u32 %s1240_s19, 9 }
  0x86   : > { %828 = vmatprep.subr.bf16.mxu0 %v969_v0  ;;  %v971_v2 = vld [vmem:[#allocation5 + $0x10] sm:$0xff]   ;;  %v972_v3 = vld [vmem:[#allocation5 + $0x18] sm:$0xff]   ;;  %v979_v5 = vld [vmem:[#allocation7] sm:$0xff]   ;;  %s259_s23 = scalar_lea.vmem [#allocation10], %s764_s21  ;;  %s1451_s9 = scalar_lea.hbm %s1499_s4, %s797_s20 }
  0x87   : > { %829 = vmatpush3.bf16.msra.mxu0 %v969_v0  ;;  %v977_v4 = vld [vmem:[%s1428_s30] sm:$0xff]   ;;  %v980_v6 = vld [vmem:[#allocation7 + $0x8] sm:$0xff]   ;;  %848 = vmatprep.subr.bf16.mxu1 %v979_v5  ;;  %v982_v10 = vld [vmem:[#allocation7 + $0x18] sm:$0xff]   ;;  %s648_s14 = sshll.u32 %s259_s23, 4  ;;  %s635_s28 = scalar_lea.sflag [#allocation4], %s1424_s11  ;;  %s1446_s14 = int_to_ptr.vmem [resolvable:$true] %s648_s14 }
  0x88   : > { %830 = vmatprep.subr.bf16.mxu0 %v970_v1  ;;  %844 = vmatprep.mubr.bf16.mxu0 %v977_v4  ;;  %v973_v7 = vld [vmem:[#allocation5 + $0x20] sm:$0xff]   ;;  %v981_v8 = vld [vmem:[#allocation7 + $0x10] sm:$0xff]   ;;  %v974_v9 = vld [vmem:[#allocation5 + $0x28] sm:$0xff]   ;;  %s1109_s19 = scalar_lea.vmem %s1446_s14, 512  ;;  %s1191_s29 = smov [#allocation10]  }
  0x89   : > { %849 = vmatpush3.bf16.msra.mxu1 %v979_v5  ;;  %v975_v11 = vld [vmem:[#allocation5 + $0x30] sm:$0xff]   ;;  %v983_v12 = vld [vmem:[#allocation7 + $0x20] sm:$0xff]   ;;  %v976_v13 = vld [vmem:[#allocation5 + $0x38] sm:$0xff]   ;;  %p1110_p10 = scmp.ne.s32.totalorder %s1446_s14, %s1109_s19  ;;  %s1113_s24 = sshll.u32 %s1191_s29, 4  ;;  %s1114_s24 = int_to_ptr.vmem [resolvable:$false] %s1113_s24 }
  0x8a   : > { %850 = vmatprep.subr.bf16.mxu1 %v980_v6  ;;  %v984_v14 = vld [vmem:[#allocation7 + $0x28] sm:$0xff]   ;;  %v985_v16 = vld [vmem:[#allocation7 + $0x30] sm:$0xff]   ;;  %v986_v17 = vld [vmem:[#allocation7 + $0x38] sm:$0xff]   ;;  %s1115_s5 = scalar_lea.vmem %s1114_s24, 1024  ;;  %p1116_p12 = scmp.lt.s32.totalorder %s1446_s14, %s1114_s24 }
  0x8b   : > { %831 = vmatpush3.bf16.msra.mxu0 %v970_v1  ;;  %v978_v15 = vld [vmem:[%s1428_s30 + $0x8] sm:$0xff]   ;;  %v987_v18 = vld [vmem:[#allocation8] sm:$0xff]   ;;  %v989_v20 = vld [vmem:[#allocation8 + $0x10] sm:$0xff]   ;;  %p1111_p3 = pnand %p1110_p10, %p1373_p5  ;;  %p1117_p1 = scmp.lt.s32.totalorder %s1115_s5, %s1109_s19 }
  0x8c   : > { %832 = vmatprep.subr.bf16.mxu0 %v971_v2  ;;  %v988_v19 = vld [vmem:[#allocation8 + $0x8] sm:$0xff]   ;;  %v990_v21 = vld [vmem:[#allocation8 + $0x18] sm:$0xff]   ;;  %v991_v22 = vld [vmem:[#allocation8 + $0x20] sm:$0xff]  }
  0x8d   : > { %851 = vmatpush3.bf16.msra.mxu1 %v980_v6  ;;  %v992_v23 = vld [vmem:[#allocation8 + $0x28] sm:$0xff]   ;;  %v993_v34 = vld [vmem:[#allocation8 + $0x30] sm:$0xff]   ;;  %v994_v35 = vld [vmem:[#allocation8 + $0x38] sm:$0xff]   ;;  %p1112_p7 = pneg %p1111_p3  ;;  %p1118_p2 = por %p1117_p1, %p1116_p12 }
  0x8e   : > { %852 = vmatprep.subr.bf16.mxu1 %v981_v8 }
  0x8f   : > { %833 = vmatpush3.bf16.msra.mxu0 %v971_v2  ;;  %p1119_p4 = pnand %p1118_p2, %p1112_p7 }
  0x90   : > { %834 = vmatprep.subr.bf16.mxu0 %v972_v3 }
  0x91   : > { %853 = vmatpush3.bf16.msra.mxu1 %v981_v8 }
  0x92   : > { %854 = vmatprep.subr.bf16.mxu1 %v982_v10 }
  0x93   : > { %835 = vmatpush3.bf16.msra.mxu0 %v972_v3 }
  0x94   : > { %836 = vmatprep.subr.bf16.mxu0 %v973_v7 }
  0x95   : > { %855 = vmatpush3.bf16.msra.mxu1 %v982_v10 }
  0x96   : > { %856 = vmatprep.subr.bf16.mxu1 %v983_v12 }
  0x97   : > { %837 = vmatpush3.bf16.msra.mxu0 %v973_v7 }
  0x98   : > { %838 = vmatprep.subr.bf16.mxu0 %v974_v9 }
  0x99   : > { %857 = vmatpush3.bf16.msra.mxu1 %v983_v12 }
  0x9a   : > { %858 = vmatprep.subr.bf16.mxu1 %v984_v14 }
  0x9b   : > { %839 = vmatpush3.bf16.msra.mxu0 %v974_v9 }
  0x9c   : > { %840 = vmatprep.subr.bf16.mxu0 %v975_v11 }
  0x9d   : > { %859 = vmatpush3.bf16.msra.mxu1 %v984_v14 }
  0x9e   : > { %860 = vmatprep.subr.bf16.mxu1 %v985_v16 }
  0x9f   : > { %841 = vmatpush3.bf16.msra.mxu0 %v975_v11 }
  0xa0   : > { %842 = vmatprep.subr.bf16.mxu0 %v976_v13 }
  0xa1   : > { %861 = vmatpush3.bf16.msra.mxu1 %v985_v16 }
  0xa2   : > { %862 = vmatprep.subr.bf16.mxu1 %v986_v17 }
  0xa3   : > { %843 = vmatpush3.bf16.msra.mxu0 %v976_v13 }
  0xa4   : > { %868 = vmatprep.subr.bf16.mxu0 %v987_v18 }
  0xa5   : > { %863 = vmatpush3.bf16.msra.mxu1 %v986_v17 }
  0xa6   : > { %845 = vmatmul.mubr.bf16.vlgmr.msra.gmra.mrb[0].mxu0 %v978_v15 }
  0xa7   : > { %869 = vmatpush3.bf16.msra.mxu0 %v987_v18 }
  0xa8   : > { %870 = vmatprep.subr.bf16.mxu0 %v988_v19 }
  0xab   : > { %871 = vmatpush3.bf16.msra.mxu0 %v988_v19 }
  0xac   : > { %872 = vmatprep.subr.bf16.mxu0 %v989_v20 }
  0xaf   : > { %873 = vmatpush3.bf16.msra.mxu0 %v989_v20 }
  0xb0   : > { %874 = vmatprep.subr.bf16.mxu0 %v990_v21 }
  0xb3   : > { %875 = vmatpush3.bf16.msra.mxu0 %v990_v21 }
  0xb4   : > { %876 = vmatprep.subr.bf16.mxu0 %v991_v22 }
  0xb7   : > { %877 = vmatpush3.bf16.msra.mxu0 %v991_v22 }
  0xb8   : > { %878 = vmatprep.subr.bf16.mxu0 %v992_v23 }
  0xbb   : > { %879 = vmatpush3.bf16.msra.mxu0 %v992_v23 }
  0xbc   : > { %880 = vmatprep.subr.bf16.mxu0 %v993_v34 }
  0xbf   : > { %881 = vmatpush3.bf16.msra.mxu0 %v993_v34 }
  0xc0   : > { %882 = vmatprep.subr.bf16.mxu0 %v994_v35 }
  0xc3   : > { %883 = vmatpush3.bf16.msra.mxu0 %v994_v35 }
 0x179   : > { %v846_v24 = vpop.f32.mrb[0].mxu0 }
 0x17a   : > { %v377_v25 = vpop.f32.mrb[1].mxu0  ;;  %v394_v31 = vmax.f32 %v846_v24, 0.0 }
 0x17b   : > { %v847_v26 = vpop.f32.mrb[2].mxu0  ;;  %v392_v29 = vmax.f32 %v377_v25, 0.0 }
 0x17c   : > { %v395_v27 = vmax.f32 %v847_v26, 0.0  ;;  %v380_v28 = vpop.f32.mrb[3].mxu0 }
 0x17d   : > { %v393_v30 = vmax.f32 %v380_v28, 0.0 }
 0x17e   : > { %v397_v33 = vpack.c.bf16 %v395_v27, %v394_v31 }
 0x17f   : > { %v396_v32 = vpack.c.bf16 %v393_v30, %v392_v29 }
 0x181   : > { %864 = vmatprep.mubr.bf16.mxu1 %v396_v32 }
 0x182   : > { %865 = vmatmul.mubr.bf16.vlgmr.msra.gmra.mrb[0].mxu1 %v397_v33 }
 0x255   : > { %v866_v36 = vpop.f32.mrb[0].mxu1 }
 0x256   : > { %v505_v37 = vadd.f32 %v866_v36, %v394_v31  ;;  %v496_v38 = vpop.f32.mrb[1].mxu1 }
 0x257   : > { %v497_v39 = vadd.f32 %v496_v38, %v392_v29  ;;  %v867_v40 = vpop.f32.mrb[2].mxu1 }
 0x258   : > { %v508_v41 = vadd.f32 %v867_v40, %v395_v27  ;;  %v499_v42 = vpop.f32.mrb[3].mxu1  ;;  %v513_v44 = vmax.f32 %v505_v37, 0.0 }
 0x259   : > { %v500_v43 = vadd.f32 %v499_v42, %v393_v30  ;;  %v511_v46 = vmax.f32 %v497_v39, 0.0 }
 0x25a   : > { %v514_v45 = vmax.f32 %v508_v41, 0.0 }
 0x25b   : > { %v512_v47 = vmax.f32 %v500_v43, 0.0 }
 0x25c   : > { %v516_v48 = vpack.c.bf16 %v514_v45, %v513_v44 }
 0x25d   : > { %v515_v49 = vpack.c.bf16 %v512_v47, %v511_v46 }
 0x25f   : > { %884 = vmatprep.mubr.bf16.mxu0 %v515_v49 }
 0x260   : > { %885 = vmatmul.mubr.bf16.vlgmr.msra.gmra.mrb[4].mxu0 %v516_v48 }
 0x333   : > { %v886_v50 = vpop.f32.mrb[4].mxu0 }
 0x334   : > { %632 = vst [vmem:[%s259_s23 + $0x10] sm:$0xff] %v886_v50  ;;  %v615_v51 = vpop.f32.mrb[5].mxu0 }
 0x335   : > { %630 = vst [vmem:[%s259_s23] sm:$0xff] %v615_v51  ;;  %v887_v52 = vpop.f32.mrb[6].mxu0 }
 0x336   : > { %633 = vst [vmem:[%s259_s23 + $0x18] sm:$0xff] %v887_v52  ;;  %v618_v53 = vpop.f32.mrb[7].mxu0 }
 0x337   : > { %631 = vst [vmem:[%s259_s23 + $0x8] sm:$0xff] %v618_v53 }
 0x338   : > { %1122 = shalt.err (!%p1119_p4)
}
 0x339   : > { %s1123_s7 = scalar_lea.hbm %s1451_s9, 512  ;;  %s1127_s27 = scalar_lea.hbm %s1499_s4, 1024 }
 0x33a   : > { %p1124_p9 = scmp.ne.s32.totalorder %s1451_s9, %s1123_s7  ;;  %p1128_p8 = scmp.lt.u32.totalorder %s1451_s9, %s1499_s4 }
 0x33b   : > { %p1129_p13 = scmp.lt.u32.totalorder %s1127_s27, %s1123_s7  ;;  %p1131_p10 = scmp.lt.u32.totalorder %s1123_s7, %s1451_s9 }
 0x33c   : > { %p1125_p0 = pnand %p1124_p9, %p1373_p5 }
 0x33d   : > { %p1130_p6 = por %p1129_p13, %p1128_p8 }
 0x33e   : > { %p1126_p11 = pneg %p1125_p0 }
 0x33f   : > { %p1132_p3 = por %p1131_p10, %p1130_p6 }
 0x341   : > { %p1133_p7 = pnand %p1132_p3, %p1126_p11 }
 0x343   : > { %1136 = shalt.err (!%p1133_p7)
}
 0x344   : > { %s1192_s23 = smov 128   ;;  %s1193_s20 = smov 8  }
 0x345   : > { %902 = dma.vmem_to_hbm [thread:$0]  (%p1373_p5), %s1446_s14, 512, %s1451_s9, %s635_s28, %s1192_s23, %s1192_s23, %s1193_s20  }
 0x346 PF: > { %s663_s6 = sand.u32 1, %s1171_s15   ;;  %p1517_p12 = scmp.ne.s32.totalorder %s1504_s22, 0 }
 0x347   : > { %p1518_p1 = scmp.ge.s32.totalorder %s1183_s18, 2  ;;  %s664_s8 = scalar_lea.sflag [#allocation4], %s663_s6 }
 0x349   : > { %p919_p2 = pnand %p1518_p1, %p1517_p12 }
 0x34b   : > { %1166 = dma.done.wait (!%p919_p2), %s664_s8, 512  }
 0x34c   : > { %1168 = vsyncadd (!%p919_p2), %s664_s8, 4294966784  ;;  %p19_p4 = scmp.ge.s32.totalorder %s1359_s10, 4   ;;  %s1519_s15 = smov %s1175_s16 }
 0x34d   : > { %s1520_s16 = smov %s1179_s17  ;;  %s1521_s17 = smov %s1369_s12 }
 0x34e   : > { %s1522_s18 = smov %s1359_s10  ;;  %21 = sbr.rel (!%p19_p4) target bundleno = 7 (0x7), region = 93 }
 0x355   :  { %669 = vsyncpa [#allocation3], 1 }
 0x356   :  { %671 = vsyncpa [#allocation3 + $0x1], 1 }
 0x357   :  { %672 = vsyncpa [#allocation6], 1 }
 0x358   :  { %673 = vsyncpa [#allocation9], 1 }
 0x359   :  { %674 = vsyncpa [#allocation4], 1 }
 0x35a   :  { %676 = vsyncpa [#allocation4 + $0x1], 1 }

// kernel: tpu_custom_call.1
= control target key start
LH: loop header
LB: loop body
LE: loop exit
PB: predicated region body
PF: predicated region fallthrough
CT: control target
= control target key end

     0   :  { %9 = vsyncpa [#allocation3], 0  ;;  %s1495_s0 = inlined_call_operand.hbm [shape: bf16[64,128], index: 0, kind: input, shape index: {}]   ;;  %s1496_s1 = inlined_call_operand.hbm [shape: bf16[128,128], index: 1, kind: input, shape index: {}]   ;;  %s1497_s2 = inlined_call_operand.hbm [shape: bf16[128,128], index: 2, kind: input, shape index: {}]   ;;  %s1498_s3 = inlined_call_operand.hbm [shape: bf16[128,128], index: 3, kind: input, shape index: {}]   ;;  %s1499_s4 = inlined_call_operand.hbm [shape: f32[64,128], index: 4, kind: output, shape index: {}]  }
   0x1   :  { %11 = vsyncpa [#allocation3 + $0x1], 0 }
   0x2   :  { %12 = vsyncpa [#allocation6], 0 }
   0x3   :  { %13 = vsyncpa [#allocation9], 0 }
   0x4   :  { %14 = vsyncpa [#allocation4], 0 }
   0x5   :  { %16 = vsyncpa [#allocation4 + $0x1], 0  ;;  %s1219_s15 = smov 0   ;;  %s1221_s16 = smov 0  }
   0x6   :  { %s1223_s17 = smov 0   ;;  %s1225_s18 = smov 0  }
   0x7 LB: > { %s1240_s19 = sadd.s32 4294967295, %s1183_s18   ;;  %s750_s20 = sadd.s32 4294967294, %s1183_s18   ;;  %s1183_s18 = sphi %s1225_s18, %s1522_s18   ;;  %s1179_s17 = sphi %s1223_s17, %s1521_s17   ;;  %s1175_s16 = sphi %s1221_s16, %s1520_s16   ;;  %s1171_s15 = sphi %s1219_s15, %s1519_s15  }
   0x8   : > { %p42_p0 = scmp.ne.s32.totalorder %s1175_s16, %s1171_s15  ;;  %p1500_p1 = scmp.eq.s32.totalorder %s1240_s19, 0 }
   0x9   : > { %p135_p3 = scmp.eq.s32.totalorder %s750_s20, 1  ;;  %p751_p5 = scmp.ge.s32.totalorder %s1183_s18, 1 }
   0xa   : > { %p1249_p4 = por %p1500_p1, %p42_p0  ;;  %p142_p7 = scmp.lt.s32.totalorder %s1183_s18, 3 }
   0xb   : > { %p1254_p6 = por %p135_p3, %p42_p0  ;;  %s1185_s24 = smov [#allocation5]  }
   0xc   : > { %s1503_s21 = scalar_select %p1249_p4, 1, 0 }
   0xd   : > { %s1504_s22 = scalar_select %p1254_p6, 1, 0 }
   0xe   : > { %p1259_p8 = pnand %p751_p5, %p142_p7  ;;  %s154_s25 = sshll.u32 %s1185_s24, 4  ;;  %s1263_s25 = int_to_ptr.vmem [resolvable:$true] %s154_s25 }
   0xf   : > { %s1186_s27 = smov [#allocation7]   ;;  %s1187_s29 = smov [#allocation8]  }
  0x10   : > { %s1505_s23 = scalar_select %p1259_p8, 1, 0 }
  0x11   : > { %p904_p9 = pneg %p1259_p8  ;;  %s167_s28 = sshll.u32 %s1186_s27, 4  ;;  %s1274_s28 = int_to_ptr.vmem [resolvable:$true] %s167_s28 }
  0x12   : > { %s1276_s30 = sshll.u32 %s1187_s29, 4  ;;  %s995_s7 = scalar_lea.hbm %s1496_s1, 1024  ;;  %s181_s30 = int_to_ptr.vmem [resolvable:$true] %s1276_s30 }
  0x13   : > { %p1270_p11 = pnand %p904_p9, %p1500_p1  ;;  %p996_p12 = scmp.ne.s32.totalorder %s1496_s1, %s995_s7 }
  0x14   : > { %p1002_p5 = scmp.lt.u32.totalorder %s995_s7, %s1496_s1 }
  0x15   : > { %p1286_p13 = pneg %p1270_p11 }
  0x17   : > { %p998_p0 = pnand %p1286_p13, %p996_p12 }
  0x19   : > { %p999_p3 = pneg %p998_p0 }
  0x1b   : > { %p1004_p7 = pnand %p1002_p5, %p999_p3 }
  0x1d   : > { %1007 = shalt.err (!%p1004_p7)
}
  0x1e   : > { %s1008_s13 = scalar_lea.vmem %s1263_s25, 1024  ;;  %p1016_p2 = scmp.lt.s32.totalorder %s1263_s25, %s1263_s25 }
  0x1f   : > { %p1009_p9 = scmp.ne.s32.totalorder %s1263_s25, %s1008_s13  ;;  %p1017_p6 = scmp.lt.s32.totalorder %s1008_s13, %s1008_s13 }
  0x21   : > { %p1011_p10 = pnand %p1009_p9, %p1286_p13  ;;  %p1018_p12 = por %p1017_p6, %p1016_p2 }
  0x23   : > { %p1012_p1 = pneg %p1011_p10 }
  0x25   : > { %p1019_p0 = pnand %p1018_p12, %p1012_p1 }
  0x27   : > { %1022 = shalt.err (!%p1019_p0)
}
  0x28   : > { %s1188_s14 = smov 64   ;;  %s1189_s20 = smov 4  }
  0x29   : > { %907 = dma.hbm_to_vmem [thread:$0]  (!%p1270_p11), %s1496_s1, 1024, %s1263_s25, [#allocation6], %s1188_s14, %s1188_s14, %s1189_s20  }
  0x2a   : > { %s1023_s6 = scalar_lea.hbm %s1497_s2, 1024 }
  0x2b   : > { %p1024_p1 = scmp.ne.s32.totalorder %s1497_s2, %s1023_s6  ;;  %p1030_p10 = scmp.lt.u32.totalorder %s1023_s6, %s1497_s2 }
  0x2d   : > { %p1026_p2 = pnand %p1024_p1, %p1286_p13 }
  0x2f   : > { %p1027_p6 = pneg %p1026_p2 }
  0x31   : > { %p1032_p3 = pnand %p1030_p10, %p1027_p6 }
  0x33   : > { %1035 = shalt.err (!%p1032_p3)
}
  0x34   : > { %s1036_s25 = scalar_lea.vmem %s1274_s28, 1024  ;;  %p1044_p12 = scmp.lt.s32.totalorder %s1274_s28, %s1274_s28 }
  0x35   : > { %p1037_p5 = scmp.ne.s32.totalorder %s1274_s28, %s1036_s25  ;;  %p1045_p0 = scmp.lt.s32.totalorder %s1036_s25, %s1036_s25 }
  0x37   : > { %p1039_p7 = pnand %p1037_p5, %p1286_p13  ;;  %p1046_p1 = por %p1045_p0, %p1044_p12 }
  0x39   : > { %p1040_p9 = pneg %p1039_p7 }
  0x3b   : > { %p1047_p2 = pnand %p1046_p1, %p1040_p9 }
  0x3d   : > { %1050 = shalt.err (!%p1047_p2)
}
  0x3e   : > { %910 = dma.hbm_to_vmem [thread:$0]  (!%p1270_p11), %s1497_s2, 1024, %s1274_s28, [#allocation6], %s1188_s14, %s1188_s14, %s1189_s20  }
  0x3f   : > { %s1051_s29 = scalar_lea.hbm %s1498_s3, 1024 }
  0x40   : > { %p1052_p6 = scmp.ne.s32.totalorder %s1498_s3, %s1051_s29  ;;  %p1058_p5 = scmp.lt.u32.totalorder %s1051_s29, %s1498_s3 }
  0x42   : > { %p1054_p10 = pnand %p1052_p6, %p1286_p13 }
  0x44   : > { %p1055_p3 = pneg %p1054_p10 }
  0x46   : > { %p1060_p7 = pnand %p1058_p5, %p1055_p3 }
  0x48   : > { %1063 = shalt.err (!%p1060_p7)
}
  0x49   : > { %s1064_s9 = scalar_lea.vmem %s181_s30, 1024  ;;  %p1072_p1 = scmp.lt.s32.totalorder %s181_s30, %s181_s30 }
  0x4a   : > { %p1065_p9 = scmp.ne.s32.totalorder %s181_s30, %s1064_s9  ;;  %p1073_p2 = scmp.lt.s32.totalorder %s1064_s9, %s1064_s9 }
  0x4c   : > { %p1067_p12 = pnand %p1065_p9, %p1286_p13  ;;  %p1074_p4 = por %p1073_p2, %p1072_p1 }
  0x4e   : > { %p1068_p0 = pneg %p1067_p12 }
  0x50   : > { %p1075_p8 = pnand %p1074_p4, %p1068_p0 }
  0x52   : > { %1078 = shalt.err (!%p1075_p8)
}
  0x53   : > { %913 = dma.hbm_to_vmem [thread:$0]  (!%p1270_p11), %s1498_s3, 1024, %s181_s30, [#allocation9], %s1188_s14, %s1188_s14, %s1189_s20  }
  0x54   : > { %s1359_s10 = sadd.s32 1, %s1183_s18   ;;  %s29_s25 = sadd.s32 1, %s1179_s17 }
  0x55   : > { %s26_s26 = ssub.s32 %s1183_s18, %s1359_s10  ;;  %p36_p8 = scmp.ne.s32.totalorder %s1179_s17, %s1175_s16 }
  0x56   : > { %p27_p4 = scmp.eq.s32.totalorder %s26_s26, 0  ;;  %p37_p13 = scmp.eq.s32.totalorder %s1183_s18, 0 }
  0x57   : > { %p925_p6 = scmp.lt.s32.totalorder %s1183_s18, 2  ;;  %p1508_p3 = scmp.eq.s32.totalorder %s1240_s19, 1 }
  0x58   : > { %s1369_s12 = scalar_select %p27_p4, %s1179_s17, %s29_s25  }
  0x59   : > { %p38_p10 = por %p37_p13, %p36_p8  ;;  %p1373_p5 = por %p1508_p3, %p36_p8 }
  0x5a   : > { %s194_s24 = sand.u32 1, %s1179_s17   ;;  %s796_s27 = sshll.u32 %s1183_s18, 8 }
  0x5b   : > { %s756_s30 = sshll.u32 %s194_s24, 4  ;;  %s1382_s6 = scalar_lea.hbm %s1495_s0, %s796_s27 }
  0x5c   : > { %s198_s7 = scalar_lea.vmem [#allocation2], %s756_s30  ;;  %p1384_p11 = pnand %p925_p6, %p38_p10 }
  0x5d   : > { %s205_s8 = sshll.u32 %s198_s7, 4  ;;  %s1390_s28 = scalar_lea.sflag [#allocation3], %s194_s24  ;;  %s1388_s8 = int_to_ptr.vmem [resolvable:$true] %s205_s8 }
  0x5e   : > { %s1079_s11 = scalar_lea.hbm %s1382_s6, 256  ;;  %p1081_p9 = pneg %p1384_p11 }
  0x5f   : > { %p1080_p7 = scmp.ne.s32.totalorder %s1382_s6, %s1079_s11  ;;  %s1084_s27 = scalar_lea.hbm %s1495_s0, 512 }
  0x60   : > { %p1085_p1 = scmp.lt.u32.totalorder %s1382_s6, %s1495_s0  ;;  %p1086_p2 = scmp.lt.u32.totalorder %s1084_s27, %s1079_s11 }
  0x61   : > { %p1082_p12 = pnand %p1081_p9, %p1080_p7  ;;  %p1088_p8 = scmp.lt.u32.totalorder %s1079_s11, %s1382_s6 }
  0x62   : > { %p1087_p4 = por %p1086_p2, %p1085_p1 }
  0x63   : > { %p1083_p0 = pneg %p1082_p12 }
  0x64   : > { %p1089_p13 = por %p1088_p8, %p1087_p4 }
  0x66   : > { %p1090_p6 = pnand %p1089_p13, %p1083_p0 }
  0x68   : > { %1093 = shalt.err (!%p1090_p6)
}
  0x69   : > { %s1094_s24 = scalar_lea.vmem %s1388_s8, 256  ;;  %s1190_s5 = smov [#allocation2]  }
  0x6a   : > { %p1095_p10 = scmp.ne.s32.totalorder %s1388_s8, %s1094_s24  ;;  %s1099_s7 = sshll.u32 %s1190_s5, 4  ;;  %s1100_s7 = int_to_ptr.vmem [resolvable:$false] %s1099_s7 }
  0x6b   : > { %s1101_s26 = scalar_lea.vmem %s1100_s7, 512  ;;  %p1102_p12 = scmp.lt.s32.totalorder %s1388_s8, %s1100_s7 }
  0x6c   : > { %p1097_p3 = pnand %p1095_p10, %p1081_p9  ;;  %p1103_p1 = scmp.lt.s32.totalorder %s1101_s26, %s1094_s24 }
  0x6e   : > { %p1098_p7 = pneg %p1097_p3  ;;  %p1104_p2 = por %p1103_p1, %p1102_p12 }
  0x70   : > { %p1105_p4 = pnand %p1104_p2, %p1098_p7 }
  0x72   : > { %1108 = shalt.err (!%p1105_p4)
}
  0x73   : > { %917 = dma.hbm_to_vmem [thread:$0]  (!%p1384_p11), %s1382_s6, 256, %s1388_s8, %s1390_s28, %s1188_s14, %s1188_s14, %s1189_s20  }
  0x74   : > { %p1511_p9 = scmp.ne.s32.totalorder %s1505_s23, 0 }
  0x75   : > { %s1424_s11 = sand.u32 (!%p1511_p9), 1, %s1175_s16   ;;  %p1512_p0 = scmp.ne.s32.totalorder (!%p1511_p9), %s1503_s21, 0 }
  0x76   : > { %217 = sbr.rel (%p1511_p9) target bundleno = 838 (0x346), region = 36  ;;  %s760_s25 = sshll.u32 (!%p1511_p9), %s1424_s11, 4 }
  0x77   : > { %s220_s27 = scalar_lea.sflag (!%p1511_p9), [#allocation3], %s1424_s11  ;;  %s1428_s30 = scalar_lea.vmem (!%p1511_p9), [#allocation2], %s760_s25 }
  0x7d   : > { %1154 = dma.done.wait (%p1512_p0), %s220_s27, 256  }
  0x7e   : > { %1156 = vsyncadd (%p1512_p0), %s220_s27, 4294967040  ;;  %p1513_p11 = scmp.eq.s32.totalorder %s1240_s19, 0 }
  0x80   : > { %1158 = dma.done.wait (%p1513_p11), [#allocation6], 2048   ;;  %p1514_p8 = pmov %p1513_p11 }
  0x82   : > { %1160 = vsyncadd (%p1514_p8), [#allocation6], 4294965248  ;;  %p1515_p13 = pmov %p1514_p8 }
  0x83   : > { %p1516_p6 = pmov %p1514_p8 }
  0x84   : > { %1162 = dma.done.wait (%p1515_p13), [#allocation9], 1024  }
  0x85   : > { %1164 = vsyncadd (%p1516_p6), [#allocation9], 4294966272  ;;  %v969_v0 = vld [vmem:[#allocation5] sm:$0xff]   ;;  %v970_v1 = vld [vmem:[#allocation5 + $0x8] sm:$0xff]   ;;  %s764_s21 = sshll.u32 %s1424_s11, 5  ;;  %s797_s20 = sshll.u32 %s1240_s19, 9 }
  0x86   : > { %828 = vmatprep.subr.bf16.mxu0 %v969_v0  ;;  %v971_v2 = vld [vmem:[#allocation5 + $0x10] sm:$0xff]   ;;  %v972_v3 = vld [vmem:[#allocation5 + $0x18] sm:$0xff]   ;;  %v979_v5 = vld [vmem:[#allocation7] sm:$0xff]   ;;  %s259_s23 = scalar_lea.vmem [#allocation10], %s764_s21  ;;  %s1451_s9 = scalar_lea.hbm %s1499_s4, %s797_s20 }
  0x87   : > { %829 = vmatpush3.bf16.msra.mxu0 %v969_v0  ;;  %v977_v4 = vld [vmem:[%s1428_s30] sm:$0xff]   ;;  %v980_v6 = vld [vmem:[#allocation7 + $0x8] sm:$0xff]   ;;  %848 = vmatprep.subr.bf16.mxu1 %v979_v5  ;;  %v982_v10 = vld [vmem:[#allocation7 + $0x18] sm:$0xff]   ;;  %s648_s14 = sshll.u32 %s259_s23, 4  ;;  %s635_s28 = scalar_lea.sflag [#allocation4], %s1424_s11  ;;  %s1446_s14 = int_to_ptr.vmem [resolvable:$true] %s648_s14 }
  0x88   : > { %830 = vmatprep.subr.bf16.mxu0 %v970_v1  ;;  %844 = vmatprep.mubr.bf16.mxu0 %v977_v4  ;;  %v973_v7 = vld [vmem:[#allocation5 + $0x20] sm:$0xff]   ;;  %v981_v8 = vld [vmem:[#allocation7 + $0x10] sm:$0xff]   ;;  %v974_v9 = vld [vmem:[#allocation5 + $0x28] sm:$0xff]   ;;  %s1109_s19 = scalar_lea.vmem %s1446_s14, 512  ;;  %s1191_s29 = smov [#allocation10]  }
  0x89   : > { %849 = vmatpush3.bf16.msra.mxu1 %v979_v5  ;;  %v975_v11 = vld [vmem:[#allocation5 + $0x30] sm:$0xff]   ;;  %v983_v12 = vld [vmem:[#allocation7 + $0x20] sm:$0xff]   ;;  %v976_v13 = vld [vmem:[#allocation5 + $0x38] sm:$0xff]   ;;  %p1110_p10 = scmp.ne.s32.totalorder %s1446_s14, %s1109_s19  ;;  %s1113_s24 = sshll.u32 %s1191_s29, 4  ;;  %s1114_s24 = int_to_ptr.vmem [resolvable:$false] %s1113_s24 }
  0x8a   : > { %850 = vmatprep.subr.bf16.mxu1 %v980_v6  ;;  %v984_v14 = vld [vmem:[#allocation7 + $0x28] sm:$0xff]   ;;  %v985_v16 = vld [vmem:[#allocation7 + $0x30] sm:$0xff]   ;;  %v986_v17 = vld [vmem:[#allocation7 + $0x38] sm:$0xff]   ;;  %s1115_s5 = scalar_lea.vmem %s1114_s24, 1024  ;;  %p1116_p12 = scmp.lt.s32.totalorder %s1446_s14, %s1114_s24 }
  0x8b   : > { %831 = vmatpush3.bf16.msra.mxu0 %v970_v1  ;;  %v978_v15 = vld [vmem:[%s1428_s30 + $0x8] sm:$0xff]   ;;  %v987_v18 = vld [vmem:[#allocation8] sm:$0xff]   ;;  %v989_v20 = vld [vmem:[#allocation8 + $0x10] sm:$0xff]   ;;  %p1111_p3 = pnand %p1110_p10, %p1373_p5  ;;  %p1117_p1 = scmp.lt.s32.totalorder %s1115_s5, %s1109_s19 }
  0x8c   : > { %832 = vmatprep.subr.bf16.mxu0 %v971_v2  ;;  %v988_v19 = vld [vmem:[#allocation8 + $0x8] sm:$0xff]   ;;  %v990_v21 = vld [vmem:[#allocation8 + $0x18] sm:$0xff]   ;;  %v991_v22 = vld [vmem:[#allocation8 + $0x20] sm:$0xff]  }
  0x8d   : > { %851 = vmatpush3.bf16.msra.mxu1 %v980_v6  ;;  %v992_v23 = vld [vmem:[#allocation8 + $0x28] sm:$0xff]   ;;  %v993_v34 = vld [vmem:[#allocation8 + $0x30] sm:$0xff]   ;;  %v994_v35 = vld [vmem:[#allocation8 + $0x38] sm:$0xff]   ;;  %p1112_p7 = pneg %p1111_p3  ;;  %p1118_p2 = por %p1117_p1, %p1116_p12 }
  0x8e   : > { %852 = vmatprep.subr.bf16.mxu1 %v981_v8 }
  0x8f   : > { %833 = vmatpush3.bf16.msra.mxu0 %v971_v2  ;;  %p1119_p4 = pnand %p1118_p2, %p1112_p7 }
  0x90   : > { %834 = vmatprep.subr.bf16.mxu0 %v972_v3 }
  0x91   : > { %853 = vmatpush3.bf16.msra.mxu1 %v981_v8 }
  0x92   : > { %854 = vmatprep.subr.bf16.mxu1 %v982_v10 }
  0x93   : > { %835 = vmatpush3.bf16.msra.mxu0 %v972_v3 }
  0x94   : > { %836 = vmatprep.subr.bf16.mxu0 %v973_v7 }
  0x95   : > { %855 = vmatpush3.bf16.msra.mxu1 %v982_v10 }
  0x96   : > { %856 = vmatprep.subr.bf16.mxu1 %v983_v12 }
  0x97   : > { %837 = vmatpush3.bf16.msra.mxu0 %v973_v7 }
  0x98   : > { %838 = vmatprep.subr.bf16.mxu0 %v974_v9 }
  0x99   : > { %857 = vmatpush3.bf16.msra.mxu1 %v983_v12 }
  0x9a   : > { %858 = vmatprep.subr.bf16.mxu1 %v984_v14 }
  0x9b   : > { %839 = vmatpush3.bf16.msra.mxu0 %v974_v9 }
  0x9c   : > { %840 = vmatprep.subr.bf16.mxu0 %v975_v11 }
  0x9d   : > { %859 = vmatpush3.bf16.msra.mxu1 %v984_v14 }
  0x9e   : > { %860 = vmatprep.subr.bf16.mxu1 %v985_v16 }
  0x9f   : > { %841 = vmatpush3.bf16.msra.mxu0 %v975_v11 }
  0xa0   : > { %842 = vmatprep.subr.bf16.mxu0 %v976_v13 }
  0xa1   : > { %861 = vmatpush3.bf16.msra.mxu1 %v985_v16 }
  0xa2   : > { %862 = vmatprep.subr.bf16.mxu1 %v986_v17 }
  0xa3   : > { %843 = vmatpush3.bf16.msra.mxu0 %v976_v13 }
  0xa4   : > { %868 = vmatprep.subr.bf16.mxu0 %v987_v18 }
  0xa5   : > { %863 = vmatpush3.bf16.msra.mxu1 %v986_v17 }
  0xa6   : > { %845 = vmatmul.mubr.bf16.vlgmr.msra.gmra.mrb[0].mxu0 %v978_v15 }
  0xa7   : > { %869 = vmatpush3.bf16.msra.mxu0 %v987_v18 }
  0xa8   : > { %870 = vmatprep.subr.bf16.mxu0 %v988_v19 }
  0xab   : > { %871 = vmatpush3.bf16.msra.mxu0 %v988_v19 }
  0xac   : > { %872 = vmatprep.subr.bf16.mxu0 %v989_v20 }
  0xaf   : > { %873 = vmatpush3.bf16.msra.mxu0 %v989_v20 }
  0xb0   : > { %874 = vmatprep.subr.bf16.mxu0 %v990_v21 }
  0xb3   : > { %875 = vmatpush3.bf16.msra.mxu0 %v990_v21 }
  0xb4   : > { %876 = vmatprep.subr.bf16.mxu0 %v991_v22 }
  0xb7   : > { %877 = vmatpush3.bf16.msra.mxu0 %v991_v22 }
  0xb8   : > { %878 = vmatprep.subr.bf16.mxu0 %v992_v23 }
  0xbb   : > { %879 = vmatpush3.bf16.msra.mxu0 %v992_v23 }
  0xbc   : > { %880 = vmatprep.subr.bf16.mxu0 %v993_v34 }
  0xbf   : > { %881 = vmatpush3.bf16.msra.mxu0 %v993_v34 }
  0xc0   : > { %882 = vmatprep.subr.bf16.mxu0 %v994_v35 }
  0xc3   : > { %883 = vmatpush3.bf16.msra.mxu0 %v994_v35 }
 0x179   : > { %v846_v24 = vpop.f32.mrb[0].mxu0 }
 0x17a   : > { %v377_v25 = vpop.f32.mrb[1].mxu0  ;;  %v394_v31 = vmax.f32 %v846_v24, 0.0 }
 0x17b   : > { %v847_v26 = vpop.f32.mrb[2].mxu0  ;;  %v392_v29 = vmax.f32 %v377_v25, 0.0 }
 0x17c   : > { %v395_v27 = vmax.f32 %v847_v26, 0.0  ;;  %v380_v28 = vpop.f32.mrb[3].mxu0 }
 0x17d   : > { %v393_v30 = vmax.f32 %v380_v28, 0.0 }
 0x17e   : > { %v397_v33 = vpack.c.bf16 %v395_v27, %v394_v31 }
 0x17f   : > { %v396_v32 = vpack.c.bf16 %v393_v30, %v392_v29 }
 0x181   : > { %864 = vmatprep.mubr.bf16.mxu1 %v396_v32 }
 0x182   : > { %865 = vmatmul.mubr.bf16.vlgmr.msra.gmra.mrb[0].mxu1 %v397_v33 }
 0x255   : > { %v866_v36 = vpop.f32.mrb[0].mxu1 }
 0x256   : > { %v505_v37 = vadd.f32 %v866_v36, %v394_v31  ;;  %v496_v38 = vpop.f32.mrb[1].mxu1 }
 0x257   : > { %v497_v39 = vadd.f32 %v496_v38, %v392_v29  ;;  %v867_v40 = vpop.f32.mrb[2].mxu1 }
 0x258   : > { %v508_v41 = vadd.f32 %v867_v40, %v395_v27  ;;  %v499_v42 = vpop.f32.mrb[3].mxu1  ;;  %v513_v44 = vmax.f32 %v505_v37, 0.0 }
 0x259   : > { %v500_v43 = vadd.f32 %v499_v42, %v393_v30  ;;  %v511_v46 = vmax.f32 %v497_v39, 0.0 }
 0x25a   : > { %v514_v45 = vmax.f32 %v508_v41, 0.0 }
 0x25b   : > { %v512_v47 = vmax.f32 %v500_v43, 0.0 }
 0x25c   : > { %v516_v48 = vpack.c.bf16 %v514_v45, %v513_v44 }
 0x25d   : > { %v515_v49 = vpack.c.bf16 %v512_v47, %v511_v46 }
 0x25f   : > { %884 = vmatprep.mubr.bf16.mxu0 %v515_v49 }
 0x260   : > { %885 = vmatmul.mubr.bf16.vlgmr.msra.gmra.mrb[4].mxu0 %v516_v48 }
 0x333   : > { %v886_v50 = vpop.f32.mrb[4].mxu0 }
 0x334   : > { %632 = vst [vmem:[%s259_s23 + $0x10] sm:$0xff] %v886_v50  ;;  %v615_v51 = vpop.f32.mrb[5].mxu0 }
 0x335   : > { %630 = vst [vmem:[%s259_s23] sm:$0xff] %v615_v51  ;;  %v887_v52 = vpop.f32.mrb[6].mxu0 }
 0x336   : > { %633 = vst [vmem:[%s259_s23 + $0x18] sm:$0xff] %v887_v52  ;;  %v618_v53 = vpop.f32.mrb[7].mxu0 }
 0x337   : > { %631 = vst [vmem:[%s259_s23 + $0x8] sm:$0xff] %v618_v53 }
 0x338   : > { %1122 = shalt.err (!%p1119_p4)
}
 0x339   : > { %s1123_s7 = scalar_lea.hbm %s1451_s9, 512  ;;  %s1127_s27 = scalar_lea.hbm %s1499_s4, 1024 }
 0x33a   : > { %p1124_p9 = scmp.ne.s32.totalorder %s1451_s9, %s1123_s7  ;;  %p1128_p8 = scmp.lt.u32.totalorder %s1451_s9, %s1499_s4 }
 0x33b   : > { %p1129_p13 = scmp.lt.u32.totalorder %s1127_s27, %s1123_s7  ;;  %p1131_p10 = scmp.lt.u32.totalorder %s1123_s7, %s1451_s9 }
 0x33c   : > { %p1125_p0 = pnand %p1124_p9, %p1373_p5 }
 0x33d   : > { %p1130_p6 = por %p1129_p13, %p1128_p8 }
 0x33e   : > { %p1126_p11 = pneg %p1125_p0 }
 0x33f   : > { %p1132_p3 = por %p1131_p10, %p1130_p6 }
 0x341   : > { %p1133_p7 = pnand %p1132_p3, %p1126_p11 }
 0x343   : > { %1136 = shalt.err (!%p1133_p7)
}
 0x344   : > { %s1192_s23 = smov 128   ;;  %s1193_s20 = smov 8  }
 0x345   : > { %902 = dma.vmem_to_hbm [thread:$0]  (%p1373_p5), %s1446_s14, 512, %s1451_s9, %s635_s28, %s1192_s23, %s1192_s23, %s1193_s20  }
 0x346 PF: > { %s663_s6 = sand.u32 1, %s1171_s15   ;;  %p1517_p12 = scmp.ne.s32.totalorder %s1504_s22, 0 }
 0x347   : > { %p1518_p1 = scmp.ge.s32.totalorder %s1183_s18, 2  ;;  %s664_s8 = scalar_lea.sflag [#allocation4], %s663_s6 }
 0x349   : > { %p919_p2 = pnand %p1518_p1, %p1517_p12 }
 0x34b   : > { %1166 = dma.done.wait (!%p919_p2), %s664_s8, 512  }
 0x34c   : > { %1168 = vsyncadd (!%p919_p2), %s664_s8, 4294966784  ;;  %p19_p4 = scmp.ge.s32.totalorder %s1359_s10, 4   ;;  %s1519_s15 = smov %s1175_s16 }
 0x34d   : > { %s1520_s16 = smov %s1179_s17  ;;  %s1521_s17 = smov %s1369_s12 }
 0x34e   : > { %s1522_s18 = smov %s1359_s10  ;;  %21 = sbr.rel (!%p19_p4) target bundleno = 7 (0x7), region = 93 }
 0x355   :  { %669 = vsyncpa [#allocation3], 1 }
 0x356   :  { %671 = vsyncpa [#allocation3 + $0x1], 1 }
 0x357   :  { %672 = vsyncpa [#allocation6], 1 }
 0x358   :  { %673 = vsyncpa [#allocation9], 1 }
 0x359   :  { %674 = vsyncpa [#allocation4], 1 }
 0x35a   :  { %676 = vsyncpa [#allocation4 + $0x1], 1 }

</bundles_post_ra>
